<compile_context>
chip_gen: v7x
topology: tpu7x:2x2x1
jax: 0.10.0
libtpu: 0.0.40
codegen_flags: <defaults>
</compile_context>

<pallas_src>
import functools
import math

import jax
import jax.numpy as jnp
from jax import lax
from jax.experimental import pallas as pl
from jax.experimental.pallas import tpu as pltpu


# --------------------------------------------------------------------------
# small helpers
# --------------------------------------------------------------------------

def _sublane_multiple(dtype):
    """Required multiple for the second-to-last tile dim (8/f32, 16/bf16, 32/i8)."""
    itemsize = jnp.dtype(dtype).itemsize
    return max(8, 32 // max(itemsize, 1))


def _fold_factor(T, S):
    """Smallest k with T % k == 0 and (k*S) % 128 == 0 (lane-dense last dim),
    grown (keeping divisibility of T) until the folded last dim is ~1024."""
    k = 128 // math.gcd(S, 128)
    if T % k != 0:
        return 1
    while (T % (2 * k) == 0) and (2 * k * S) <= 1024:
        k *= 2
    return k


def _tpu_info():
    try:
        return pltpu.get_tpu_info()
    except Exception:
        return None


def _vmem_capacity_bytes():
    try:
        info = _tpu_info()
        if info is not None:
            for name in ("vmem_capacity_bytes", "vmem_size_bytes", "vmem_bytes"):
                v = getattr(info, name, None)
                if v:
                    return int(v)
    except Exception:
        pass
    return 64 * 1024 * 1024  # conservative fallback (v7x physical VMEM per TC)


def _num_tensorcores_guess():
    try:
        info = _tpu_info()
        if info is not None:
            for name in ("num_cores", "core_count", "num_tensorcores",
                         "tensorcores_per_chip"):
                v = getattr(info, name, None)
                if v:
                    return int(v)
    except Exception:
        pass
    # heuristic: 64 MiB VMEM per core looks like v7x (2 TCs per chip)
    return 2 if _vmem_capacity_bytes() <= (64 << 20) else 1


def _largest_divisor(n, limit, prefer_multiple_of=1):
    """Largest divisor of n that is <= limit, preferring multiples of
    `prefer_multiple_of`."""
    limit = max(int(limit), 1)
    best_pref, best_any = 0, 0
    d = 1
    while d * d <= n:
        if n % d == 0:
            for c in (d, n // d):
                if c <= limit:
                    if c > best_any:
                        best_any = c
                    if c % prefer_multiple_of == 0 and c > best_pref:
                        best_pref = c
        d += 1
    if best_pref:
        return best_pref
    if best_any:
        return best_any
    return n


def _max_chunk_rows(L, sub):
    # target at most ~512 KiB of transient f32 per chunk and <= 512 rows
    return max(sub, min(512, (512 * 1024) // (4 * max(L, 1))))


def _pick_chunk(rows, L, sub):
    """Row-chunk size for in-kernel chunked processing; divides `rows`."""
    c = _largest_divisor(rows, _max_chunk_rows(L, sub), sub)
    if c % sub != 0 and rows > sub:
        return rows  # no well-aligned divisor -> process as a single chunk
    return c


def _pick_row_tile(R, sub, max_rows):
    """Return (rT, Rp): row-tile (sublane-aligned when possible) and the
    (possibly zero-padded) row count Rp that rT divides."""
    max_rows = max(int(max_rows), sub)
    if R <= max_rows:
        return R, R
    rT = _largest_divisor(R, max_rows, sub)
    if rT >= sub and rT % sub == 0:
        return rT, R
    # no aligned divisor (prime / unaligned R): pad rows up to an aligned tile
    rT = max(sub, (max_rows // sub) * sub)
    Rp = ((R + rT - 1) // rT) * rT
    return rT, Rp


def _pick_bB(B, per_elem_vmem, per_elem_hbm, budget, min_steps):
    """Pack batch elements per grid step: ~2-4 MiB per-step input DMA, keep
    >= min_steps grid steps so the pipeline (and megacore on v7x) stays busy."""
    bB = 1
    target_block = 4 << 20
    while (B % (2 * bB) == 0
           and 2 * bB * per_elem_vmem <= budget
           and (B // (2 * bB)) >= min_steps
           and bB * per_elem_hbm < target_block):
        bB *= 2
    return bB


# --------------------------------------------------------------------------
# in-kernel chunked helpers (shared by all paths)
# --------------------------------------------------------------------------

def _accum_stats_chunked(x_ref, rows, chunk):
    """Lane-wise f32 (sum, sumsq) over the row axis, accumulated in row
    chunks so no full-block f32 temporary is ever materialized.

    x_ref: (bB, rows, L) ref.  Returns two (bB, 1, L) f32 arrays.
    """
    bB = x_ref.shape[0]
    L = x_ref.shape[-1]
    nc = rows // chunk
    if nc == 1:
        xc = x_ref[...].astype(jnp.float32)
        return (jnp.sum(xc, axis=1, keepdims=True),
                jnp.sum(xc * xc, axis=1, keepdims=True))

    def body(i, carry):
        s, sq = carry
        r0 = pl.multiple_of(i * chunk, chunk)
        xc = x_ref[:, pl.ds(r0, chunk), :].astype(jnp.float32)
        s = s + jnp.sum(xc, axis=1, keepdims=True)
        sq = sq + jnp.sum(xc * xc, axis=1, keepdims=True)
        return s, sq

    init = (jnp.zeros((bB, 1, L), jnp.float32),
            jnp.zeros((bB, 1, L), jnp.float32))
    return lax.fori_loop(0, nc, body, init)


def _finalize_stats(s, sq, inv_n, eps):
    """(bB,1,L) partials -> (bB,1,1) mean, rstd (single small cross-lane reduce)."""
    mean = jnp.sum(s, axis=-1, keepdims=True) * inv_n
    ex2 = jnp.sum(sq, axis=-1, keepdims=True) * inv_n
    var = jnp.maximum(ex2 - mean * mean, 0.0) + eps
    return mean, lax.rsqrt(var)


def _apply_affine_chunked(x_ref, o_ref, scale, shift, rows, chunk):
    """o = x * scale + shift, processed in row chunks (no full f32 temp)."""
    nc = rows // chunk
    if nc == 1:
        xc = x_ref[...].astype(jnp.float32)
        o_ref[...] = (xc * scale + shift).astype(o_ref.dtype)
        return

    @pl.loop(0, nc)
    def _(i):
        r0 = pl.multiple_of(i * chunk, chunk)
        xc = x_ref[:, pl.ds(r0, chunk), :].astype(jnp.float32)
        o_ref[:, pl.ds(r0, chunk), :] = (xc * scale + shift).astype(o_ref.dtype)


# --------------------------------------------------------------------------
# path 1: auto-pipelined resident kernel (whole batch element(s) per grid step)
# --------------------------------------------------------------------------

def _gln_resident_kernel(x_ref, g_ref, b_ref, o_ref, *, eps, chunk):
    R = x_ref.shape[1]
    L = x_ref.shape[2]
    s, sq = _accum_stats_chunked(x_ref, R, chunk)            # (bB, 1, L)
    mean, rstd = _finalize_stats(s, sq, 1.0 / float(R * L), eps)

    g = g_ref[...].astype(jnp.float32)                       # (1, 1, L)
    b = b_ref[...].astype(jnp.float32)
    scale = rstd * g                                         # (bB, 1, L)
    shift = b - mean * scale
    _apply_affine_chunked(x_ref, o_ref, scale, shift, R, chunk)


def _gln_resident(xf, gf, bf, eps, bB, chunk, vmem_limit):
    B, R, L = xf.shape
    kernel = functools.partial(_gln_resident_kernel, eps=eps, chunk=chunk)
    return pl.pallas_call(
        kernel,
        out_shape=jax.ShapeDtypeStruct((B, R, L), xf.dtype),
        grid_spec=pltpu.PrefetchScalarGridSpec(
            num_scalar_prefetch=0,
            grid=(B // bB,),
            in_specs=[
                pl.BlockSpec((bB, R, L), lambda i: (i, 0, 0)),
                pl.BlockSpec((1, 1, L), lambda i: (0, 0, 0)),
                pl.BlockSpec((1, 1, L), lambda i: (0, 0, 0)),
            ],
            out_specs=pl.BlockSpec((bB, R, L), lambda i: (i, 0, 0)),
        ),
        compiler_params=pltpu.CompilerParams(
            dimension_semantics=("parallel",),
            vmem_limit_bytes=vmem_limit,
        ),
    )(xf, gf, bf)


# --------------------------------------------------------------------------
# path 2: manual-resident (single VMEM scratch + explicit DMA) — covers batch
#         elements too big for the auto-pipelined path but small enough for a
#         single-buffered VMEM copy (important on v7x's 64 MiB VMEM).
# --------------------------------------------------------------------------

def _gln_manual_kernel(x_hbm, g_ref, b_ref, o_hbm, xbuf, sem, *, eps, chunk):
    bidx = pl.program_id(0)
    R, L = xbuf.shape[1], xbuf.shape[2]

    cin = pltpu.make_async_copy(x_hbm.at[bidx], xbuf.at[0], sem.at[0])
    cin.start()
    cin.wait()

    s, sq = _accum_stats_chunked(xbuf, R, chunk)             # (1, 1, L)
    mean, rstd = _finalize_stats(s, sq, 1.0 / float(R * L), eps)

    g = g_ref[...].astype(jnp.float32)
    b = b_ref[...].astype(jnp.float32)
    scale = rstd * g
    shift = b - mean * scale

    # normalize in place in the VMEM scratch, then DMA the result out
    _apply_affine_chunked(xbuf, xbuf, scale, shift, R, chunk)

    cout = pltpu.make_async_copy(xbuf.at[0], o_hbm.at[bidx], sem.at[1])
    cout.start()
    cout.wait()


def _gln_manual(xf, gf, bf, eps, chunk, vmem_limit):
    B, R, L = xf.shape
    kernel = functools.partial(_gln_manual_kernel, eps=eps, chunk=chunk)
    return pl.pallas_call(
        kernel,
        out_shape=jax.ShapeDtypeStruct((B, R, L), xf.dtype),
        grid_spec=pltpu.PrefetchScalarGridSpec(
            num_scalar_prefetch=0,
            grid=(B,),
            in_specs=[
                pl.BlockSpec(memory_space=pl.ANY),           # x stays in HBM
                pl.BlockSpec((1, 1, L), lambda b: (0, 0, 0)),
                pl.BlockSpec((1, 1, L), lambda b: (0, 0, 0)),
            ],
            out_specs=pl.BlockSpec(memory_space=pl.ANY),     # written via DMA
            scratch_shapes=[
                pltpu.VMEM((1, R, L), xf.dtype),
                pltpu.SemaphoreType.DMA((2,)),
            ],
        ),
        compiler_params=pltpu.CompilerParams(
            dimension_semantics=("parallel",),
            vmem_limit_bytes=vmem_limit,
        ),
    )(xf, gf, bf)


# --------------------------------------------------------------------------
# path 3: two-pass T-tiled fallback (huge batch elements / tiny VMEM)
# --------------------------------------------------------------------------

def _gln_stats_kernel(x_ref, psum_ref, psq_ref, *, chunk):
    # Per-tile lane-wise partial sums; both grid axes are independent
    # ("parallel","parallel") so small-B workloads still use both TCs on v7x.
    s, sq = _accum_stats_chunked(x_ref, x_ref.shape[1], chunk)   # (1, 1, L)
    psum_ref[...] = s.reshape(psum_ref.shape)
    psq_ref[...] = sq.reshape(psq_ref.shape)


def _gln_norm_kernel(x_ref, scale_ref, shift_ref, o_ref, *, chunk):
    # mean/rstd pre-folded into lane-dense per-batch scale/shift -> single FMA.
    _apply_affine_chunked(x_ref, o_ref, scale_ref[...], shift_ref[...],
                          x_ref.shape[1], chunk)


def _gln_tiled(xf, gf, bf, eps, budget, vmem_limit):
    B, R, L = xf.shape
    dtype = xf.dtype
    itemsize = jnp.dtype(dtype).itemsize
    sub = _sublane_multiple(dtype)
    n = float(R * L)                                    # true per-batch count

    # normalize-pass tile: input + output double-buffered (+ chunk temps)
    max_rows_norm = max(sub, budget // (L * 4 * itemsize + 32))
    rT_norm, Rp = _pick_row_tile(R, sub, max_rows_norm)
    if Rp != R:
        # zero rows contribute nothing to sum / sumsq; sliced off at the end
        xf = jnp.pad(xf, ((0, 0), (0, Rp - R), (0, 0)))

    # stats-pass tile: only the input is double-buffered -> bigger read tiles
    max_rows_stats = max(sub, budget // (L * 2 * itemsize + 16))
    rT_stats = _largest_divisor(Rp, max_rows_stats, sub)
    if rT_stats % sub != 0 and rT_stats != Rp:
        rT_stats = rT_norm                              # safe aligned fallback
    nR_s = Rp // rT_stats
    chunk_s = _pick_chunk(rT_stats, L, sub)

    psum, psq = pl.pallas_call(
        functools.partial(_gln_stats_kernel, chunk=chunk_s),
        out_shape=(jax.ShapeDtypeStruct((B, nR_s, 1, L), jnp.float32),
                   jax.ShapeDtypeStruct((B, nR_s, 1, L), jnp.float32)),
        grid_spec=pltpu.PrefetchScalarGridSpec(
            num_scalar_prefetch=0,
            grid=(B, nR_s),
            in_specs=[pl.BlockSpec((1, rT_stats, L), lambda b, r: (b, r, 0))],
            out_specs=(pl.BlockSpec((1, 1, 1, L), lambda b, r: (b, r, 0, 0)),
                       pl.BlockSpec((1, 1, 1, L), lambda b, r: (b, r, 0, 0))),
        ),
        compiler_params=pltpu.CompilerParams(
            dimension_semantics=("parallel", "parallel"),
            vmem_limit_bytes=vmem_limit,
        ),
    )(xf)

    # tiny final reduction + rsqrt in plain JAX (B * nR_s * L elements)
    s = jnp.sum(psum, axis=(1, 2, 3))
    sq = jnp.sum(psq, axis=(1, 2, 3))
    mean = s / n
    var = jnp.maximum(sq / n - mean * mean, 0.0) + eps
    rstd = lax.rsqrt(var)

    # fold per-batch mean/rstd into lane-dense scale/shift vectors
    g32 = gf.astype(jnp.float32)                        # (1, 1, L)
    b32 = bf.astype(jnp.float32)
    scale = rstd[:, None, None] * g32                   # (B, 1, L)
    shift = b32 - mean[:, None, None] * scale           # (B, 1, L)

    nR_n = Rp // rT_norm
    chunk_n = _pick_chunk(rT_norm, L, sub)
    out = pl.pallas_call(
        functools.partial(_gln_norm_kernel, chunk=chunk_n),
        out_shape=jax.ShapeDtypeStruct((B, Rp, L), dtype),
        grid_spec=pltpu.PrefetchScalarGridSpec(
            num_scalar_prefetch=0,
            grid=(B, nR_n),
            in_specs=[
                pl.BlockSpec((1, rT_norm, L), lambda b, r: (b, r, 0)),
                pl.BlockSpec((1, 1, L), lambda b, r: (b, 0, 0)),
                pl.BlockSpec((1, 1, L), lambda b, r: (b, 0, 0)),
            ],
            out_specs=pl.BlockSpec((1, rT_norm, L), lambda b, r: (b, r, 0)),
        ),
        compiler_params=pltpu.CompilerParams(
            dimension_semantics=("parallel", "parallel"),
            vmem_limit_bytes=vmem_limit,
        ),
    )(xf, scale, shift)

    if Rp != R:
        out = out[:, :R, :]
    return out


# --------------------------------------------------------------------------
# public wrapper
# --------------------------------------------------------------------------

def global_layer_norm(x, gamma, beta, eps=1e-8, *,
                      vmem_budget_bytes=None, _force_path=None):
    """Global Layer Norm (gLN).

    Args:
      x: [batch, T, size]
      gamma, beta: [1, 1, size]
      vmem_budget_bytes: optional override of the VMEM block budget (testing).
      _force_path: optional 'resident' | 'manual' | 'tiled' (testing hook).
    Returns:
      [batch, T, size], same dtype as x.
    """
    B, T, S = x.shape
    orig_dtype = x.dtype

    # Lane-dense folding: (B, T, S) -> (B, R, L), L = k*S a multiple of 128
    # (unmasked vst on the output); gamma/beta tiled k times to match.
    k = _fold_factor(T, S)
    R, L = T // k, k * S
    xf = x.reshape(B, R, L)
    gf = jnp.tile(gamma.reshape(1, 1, S), (1, 1, k))
    bf = jnp.tile(beta.reshape(1, 1, S), (1, 1, k))

    itemsize = jnp.dtype(orig_dtype).itemsize
    sub = _sublane_multiple(orig_dtype)

    cap = _vmem_capacity_bytes()
    vmem_limit = int(max(32 << 20, min(cap - (16 << 20), 100 << 20)))
    budget = (int(vmem_budget_bytes) if vmem_budget_bytes is not None
              else int(vmem_limit * 0.75))

    min_steps = 4 if _num_tensorcores_guess() >= 2 else 2

    chunk = _pick_chunk(R, L, sub)
    temps = chunk * L * 16                  # transient f32 chunk working set
    elem_hbm = R * L * itemsize             # one batch element in HBM
    elem_auto = 4 * elem_hbm + temps        # in + out, double-buffered blocks
    elem_manual = elem_hbm + temps          # single VMEM scratch, in-place

    path = _force_path
    if path is None:
        if elem_auto <= budget:
            path = "resident"
        elif elem_manual <= budget:
            path = "manual"
        else:
            path = "tiled"

    if path == "resident":
        bB = _pick_bB(B, elem_auto, elem_hbm, budget, min_steps)
        out = _gln_resident(xf, gf, bf, eps, bB, chunk, vmem_limit)
    elif path == "manual":
        out = _gln_manual(xf, gf, bf, eps, chunk, vmem_limit)
    else:
        out = _gln_tiled(xf, gf, bf, eps, budget, vmem_limit)

    return out.reshape(B, T, S).astype(orig_dtype)


# --------------------------------------------------------------------------
# reference + self-test
# --------------------------------------------------------------------------

def _reference(x, gamma, beta, eps=1e-8):
    x32 = x.astype(jnp.float32)
    mean = jnp.mean(x32, axis=(1, 2), keepdims=True)
    var = jnp.mean((x32 - mean) ** 2, axis=(1, 2), keepdims=True) + eps
    y = (x32 - mean) / jnp.sqrt(var)
    return (y * gamma.astype(jnp.float32) + beta.astype(jnp.float32)).astype(x.dtype)


if __name__ == "__main__":
    key = jax.random.PRNGKey(0)
    k1, k2, k3, k4 = jax.random.split(key, 4)

    # Case 1: small shape -> auto-pipelined resident path
    # (S=32 folds to a 256-wide lane-dense last dim, batch packing applies).
    B, T, S = 4, 8, 32
    x = jax.random.normal(k1, (B, T, S), dtype=jnp.float32)
    gamma = 1.0 + 0.1 * jax.random.normal(k2, (1, 1, S), dtype=jnp.float32)
    beta = 0.1 * jax.random.normal(k3, (1, 1, S), dtype=jnp.float32)
    out = jax.block_until_ready(global_layer_norm(x, gamma, beta))
    ref = _reference(x, gamma, beta)
    assert out.shape == (B, T, S)
    assert jnp.allclose(out, ref, atol=1e-4, rtol=1e-4), "resident path mismatch"

    # Cases 2-4: a larger T exercising every code path on the same data.
    B2, T2, S2 = 2, 512, 64
    x2 = jax.random.normal(k4, (B2, T2, S2), dtype=jnp.float32)
    gamma2 = 1.0 + 0.1 * jax.random.normal(k2, (1, 1, S2), dtype=jnp.float32)
    beta2 = 0.1 * jax.random.normal(k3, (1, 1, S2), dtype=jnp.float32)
    ref2 = _reference(x2, gamma2, beta2)

    # manual-resident path (single VMEM scratch + explicit DMAs)
    out_manual = jax.block_until_ready(
        global_layer_norm(x2, gamma2, beta2, _force_path="manual"))
    assert jnp.allclose(out_manual, ref2, atol=2e-4, rtol=2e-4), "manual path mismatch"

    # two-pass tiled path (small budget -> multiple row tiles per batch element)
    out_tiled = jax.block_until_ready(
        global_layer_norm(x2, gamma2, beta2,
                          vmem_budget_bytes=256 * 1024, _force_path="tiled"))
    assert jnp.allclose(out_tiled, ref2, atol=2e-4, rtol=2e-4), "tiled path mismatch"

    # default dispatch (picks the resident path at default VMEM budgets)
    out_auto = jax.block_until_ready(global_layer_norm(x2, gamma2, beta2))
    assert jnp.allclose(out_auto, ref2, atol=2e-4, rtol=2e-4), "auto dispatch mismatch"

    print("KERNEL_OK")
</pallas_src>

<mosaic_0001>
module attributes {stable_mosaic.version = 11 : i64} {
  func.func @_gln_resident_kernel(%arg0: i32, %arg1: memref<1x1x256xf32, #tpu.memory_space<vmem>>, %arg2: memref<1x1x256xf32, #tpu.memory_space<vmem>>, %arg3: memref<1x1x256xf32, #tpu.memory_space<vmem>>, %arg4: memref<1x1x256xf32, #tpu.memory_space<vmem>>) attributes {dimension_semantics = [#tpu.dimension_semantics<parallel>], iteration_bounds = array<i64: 4>, scalar_prefetch = 0 : i64, scratch_operands = 0 : i64, tpu.core_type = #tpu.core_type<tc>, window_params = [{transform_indices = @transform_0, window_bounds = array<i64: 1, 1, 256>}, {pipeline_mode = #tpu.pipeline_mode<synchronous>, transform_indices = @transform_1, window_bounds = array<i64: 1, 1, 256>}, {pipeline_mode = #tpu.pipeline_mode<synchronous>, transform_indices = @transform_2, window_bounds = array<i64: 1, 1, 256>}, {transform_indices = @transform_3, window_bounds = array<i64: 1, 1, 256>}]} {
    %c0 = arith.constant 0 : index
    %c0_0 = arith.constant 0 : index
    %c0_1 = arith.constant 0 : index
    %0 = vector.load %arg1[%c0, %c0_0, %c0_1] : memref<1x1x256xf32, #tpu.memory_space<vmem>>, vector<1x1x256xf32>
    %cst = arith.constant dense<0.000000e+00> : vector<1x256xf32>
    %1 = vector.multi_reduction <add>, %0, %cst [1] : vector<1x1x256xf32> to vector<1x256xf32>
    %2 = vector.shape_cast %1 : vector<1x256xf32> to vector<1x1x256xf32>
    %3 = arith.mulf %0, %0 : vector<1x1x256xf32>
    %cst_2 = arith.constant dense<0.000000e+00> : vector<1x256xf32>
    %4 = vector.multi_reduction <add>, %3, %cst_2 [1] : vector<1x1x256xf32> to vector<1x256xf32>
    %5 = vector.shape_cast %4 : vector<1x256xf32> to vector<1x1x256xf32>
    %cst_3 = arith.constant dense<0.000000e+00> : vector<1x1xf32>
    %6 = vector.multi_reduction <add>, %2, %cst_3 [2] : vector<1x1x256xf32> to vector<1x1xf32>
    %7 = vector.shape_cast %6 : vector<1x1xf32> to vector<1x1x1xf32>
    %cst_4 = arith.constant 3.906250e-03 : f32
    %8 = vector.broadcast %cst_4 : f32 to vector<1x1x1xf32>
    %9 = arith.mulf %7, %8 : vector<1x1x1xf32>
    %cst_5 = arith.constant dense<0.000000e+00> : vector<1x1xf32>
    %10 = vector.multi_reduction <add>, %5, %cst_5 [2] : vector<1x1x256xf32> to vector<1x1xf32>
    %11 = vector.shape_cast %10 : vector<1x1xf32> to vector<1x1x1xf32>
    %cst_6 = arith.constant 3.906250e-03 : f32
    %12 = vector.broadcast %cst_6 : f32 to vector<1x1x1xf32>
    %13 = arith.mulf %11, %12 : vector<1x1x1xf32>
    %14 = arith.mulf %9, %9 : vector<1x1x1xf32>
    %15 = arith.subf %13, %14 : vector<1x1x1xf32>
    %cst_7 = arith.constant 0.000000e+00 : f32
    %16 = vector.broadcast %cst_7 : f32 to vector<1x1x1xf32>
    %17 = arith.maximumf %15, %16 : vector<1x1x1xf32>
    %cst_8 = arith.constant 9.99999993E-9 : f32
    %18 = vector.broadcast %cst_8 : f32 to vector<1x1x1xf32>
    %19 = arith.addf %17, %18 : vector<1x1x1xf32>
    %20 = math.rsqrt %19 : vector<1x1x1xf32>
    %c0_9 = arith.constant 0 : index
    %c0_10 = arith.constant 0 : index
    %c0_11 = arith.constant 0 : index
    %21 = vector.load %arg2[%c0_9, %c0_10, %c0_11] : memref<1x1x256xf32, #tpu.memory_space<vmem>>, vector<1x1x256xf32>
    %c0_12 = arith.constant 0 : index
    %c0_13 = arith.constant 0 : index
    %c0_14 = arith.constant 0 : index
    %22 = vector.load %arg3[%c0_12, %c0_13, %c0_14] : memref<1x1x256xf32, #tpu.memory_space<vmem>>, vector<1x1x256xf32>
    %23 = vector.broadcast %20 : vector<1x1x1xf32> to vector<1x1x256xf32>
    %24 = arith.mulf %23, %21 : vector<1x1x256xf32>
    %25 = vector.broadcast %9 : vector<1x1x1xf32> to vector<1x1x256xf32>
    %26 = arith.mulf %25, %24 : vector<1x1x256xf32>
    %27 = arith.subf %22, %26 : vector<1x1x256xf32>
    %c0_15 = arith.constant 0 : index
    %c0_16 = arith.constant 0 : index
    %c0_17 = arith.constant 0 : index
    %28 = vector.load %arg1[%c0_15, %c0_16, %c0_17] : memref<1x1x256xf32, #tpu.memory_space<vmem>>, vector<1x1x256xf32>
    %29 = arith.mulf %28, %24 : vector<1x1x256xf32>
    %30 = arith.addf %29, %27 : vector<1x1x256xf32>
    %c0_18 = arith.constant 0 : index
    %c0_19 = arith.constant 0 : index
    %c0_20 = arith.constant 0 : index
    %31 = vector.load %arg4[%c0_18, %c0_19, %c0_20] : memref<1x1x256xf32, #tpu.memory_space<vmem>>, vector<1x1x256xf32>
    tpu.vector_store %arg4[%c0_18, %c0_19, %c0_20], %30 {strides = array<i32>} : memref<1x1x256xf32, #tpu.memory_space<vmem>>, vector<1x1x256xf32>,
    return
  }
  func.func @transform_0(%arg0: i32) -> (i32, i32, i32) {
    %c0_i32 = arith.constant 0 : i32
    %c0_i32_0 = arith.constant 0 : i32
    %c0_i32_1 = arith.constant 0 : i32
    return %arg0, %c0_i32, %c0_i32_0 : i32, i32, i32
  }
  func.func @transform_1(%arg0: i32) -> (i32, i32, i32) {
    %c0_i32 = arith.constant 0 : i32
    %c0_i32_0 = arith.constant 0 : i32
    %c0_i32_1 = arith.constant 0 : i32
    %c0_i32_2 = arith.constant 0 : i32
    return %c0_i32, %c0_i32_0, %c0_i32_1 : i32, i32, i32
  }
  func.func @transform_2(%arg0: i32) -> (i32, i32, i32) {
    %c0_i32 = arith.constant 0 : i32
    %c0_i32_0 = arith.constant 0 : i32
    %c0_i32_1 = arith.constant 0 : i32
    %c0_i32_2 = arith.constant 0 : i32
    return %c0_i32, %c0_i32_0, %c0_i32_1 : i32, i32, i32
  }
  func.func @transform_3(%arg0: i32) -> (i32, i32, i32) {
    %c0_i32 = arith.constant 0 : i32
    %c0_i32_0 = arith.constant 0 : i32
    %c0_i32_1 = arith.constant 0 : i32
    return %arg0, %c0_i32, %c0_i32_0 : i32, i32, i32
  }
}

</mosaic_0001>

<bundles_post_ra>
// kernel: tpu_custom_call.1
= control target key start
LH: loop header
LB: loop body
LE: loop exit
PB: predicated region body
PF: predicated region fallthrough
CT: control target
= control target key end

     0   :  { %8 = vsyncpa [#allocation3], 0  ;;  %s732_s0 = inlined_call_operand.hbm [shape: f32[4,1,256], index: 0, kind: input, shape index: {}]   ;;  %s733_s1 = inlined_call_operand.vmem [shape: f32[1,1,256], index: 1, kind: input, shape index: {}]   ;;  %s734_s2 = inlined_call_operand.vmem [shape: f32[1,1,256], index: 2, kind: input, shape index: {}]   ;;  %s735_s3 = inlined_call_operand.hbm [shape: f32[4,1,256], index: 3, kind: output, shape index: {}]  }
   0x1   :  { %10 = vsyncpa [#allocation3 + $0x1], 0 }
   0x2   :  { %11 = vsyncpa [#allocation4], 0 }
   0x3   :  { %13 = vsyncpa [#allocation4 + $0x1], 0  ;;  %s563_s12 = smov 0   ;;  %s565_s13 = smov 0  }
   0x4   :  { %s567_s14 = smov 0   ;;  %s569_s15 = smov 0  }
   0x5 LB: > { %s584_s16 = sadd.s32 4294967295, %s538_s15   ;;  %s377_s17 = sadd.s32 4294967294, %s538_s15   ;;  %s538_s15 = sphi %s569_s15, %s749_s15   ;;  %s534_s14 = sphi %s567_s14, %s748_s14   ;;  %s530_s13 = sphi %s565_s13, %s747_s13   ;;  %s526_s12 = sphi %s563_s12, %s746_s12  }
   0x6   : > { %s588_s18 = sadd.s32 1, %s538_s15   ;;  %s26_s19 = sadd.s32 1, %s534_s14 }
   0x7   : > { %s23_s20 = ssub.s32 %s538_s15, %s588_s18  ;;  %p33_p0 = scmp.ne.s32.totalorder %s534_s14, %s530_s13 }
   0x8   : > { %p24_p1 = scmp.eq.s32.totalorder %s23_s20, 0  ;;  %p34_p2 = scmp.eq.s32.totalorder %s538_s15, 0 }
   0x9   : > { %p39_p3 = scmp.ne.s32.totalorder %s530_s13, %s526_s12  ;;  %p40_p4 = scmp.eq.s32.totalorder %s584_s16, 0 }
   0xa   : > { %s600_s21 = scalar_select %p24_p1, %s534_s14, %s26_s19  }
   0xb   : > { %p602_p5 = por %p34_p2, %p33_p0  ;;  %p606_p6 = por %p40_p4, %p39_p3 }
   0xc   : > { %p105_p7 = scmp.eq.s32.totalorder %s584_s16, 3  ;;  %p111_p8 = scmp.eq.s32.totalorder %s377_s17, 3 }
   0xd   : > { %p405_p9 = scmp.lt.s32.totalorder %s538_s15, 4  ;;  %s137_s26 = sand.u32 1, %s534_s14  }
   0xe   : > { %p612_p10 = por %p105_p7, %p33_p0  ;;  %p616_p11 = por %p111_p8, %p39_p3 }
   0xf   : > { %s391_s27 = sshll.u32 %s538_s15, 5  ;;  %s380_s28 = sshll.u32 %s137_s26, 1 }
  0x10   : > { %s739_s24 = scalar_select %p612_p10, 1, 0 }
  0x11   : > { %s740_s25 = scalar_select %p616_p11, 1, 0 }
  0x12   : > { %s625_s4 = scalar_lea.hbm %s732_s0, %s391_s27  ;;  %s141_s5 = scalar_lea.vmem [#allocation2], %s380_s28 }
  0x13   : > { %s149_s6 = sshll.u32 %s141_s5, 4  ;;  %p629_p12 = pnand %p405_p9, %p602_p5  ;;  %s633_s6 = int_to_ptr.vmem [resolvable:$true] %s149_s6 }
  0x14   : > { %s138_s8 = scalar_lea.sflag [#allocation3], %s137_s26  ;;  %s442_s9 = scalar_lea.hbm %s625_s4, 32 }
  0x15   : > { %p443_p1 = scmp.ne.s32.totalorder %s625_s4, %s442_s9  ;;  %p444_p2 = pneg %p629_p12 }
  0x16   : > { %s447_s17 = scalar_lea.hbm %s732_s0, 128  ;;  %p448_p5 = scmp.lt.u32.totalorder %s625_s4, %s732_s0 }
  0x17   : > { %p445_p3 = pnand %p444_p2, %p443_p1  ;;  %p449_p7 = scmp.lt.u32.totalorder %s447_s17, %s442_s9 }
  0x18   : > { %p451_p9 = scmp.lt.u32.totalorder %s442_s9, %s625_s4 }
  0x19   : > { %p446_p4 = pneg %p445_p3  ;;  %p450_p8 = por %p449_p7, %p448_p5 }
  0x1b   : > { %p452_p13 = por %p451_p9, %p450_p8 }
  0x1d   : > { %p453_p0 = pnand %p452_p13, %p446_p4 }
  0x1f   : > { %456 = shalt.err (!%p453_p0)
}
  0x20   : > { %s457_s22 = scalar_lea.vmem %s633_s6, 32  ;;  %s540_s26 = smov [#allocation2]  }
  0x21   : > { %p458_p1 = scmp.ne.s32.totalorder %s633_s6, %s457_s22  ;;  %s462_s27 = sshll.u32 %s540_s26, 4  ;;  %s463_s27 = int_to_ptr.vmem [resolvable:$false] %s462_s27 }
  0x22   : > { %s464_s28 = scalar_lea.vmem %s463_s27, 64  ;;  %p465_p10 = scmp.lt.s32.totalorder %s633_s6, %s463_s27 }
  0x23   : > { %p460_p3 = pnand %p458_p1, %p444_p2  ;;  %p466_p5 = scmp.lt.s32.totalorder %s464_s28, %s457_s22 }
  0x25   : > { %p461_p11 = pneg %p460_p3  ;;  %p467_p7 = por %p466_p5, %p465_p10 }
  0x27   : > { %p468_p8 = pnand %p467_p7, %p461_p11 }
  0x29   : > { %471 = shalt.err (!%p468_p8)
}
  0x2a   : > { %400 = dma.hbm_to_vmem [thread:$0]  (!%p629_p12), %s625_s4, 32, %s633_s6, %s138_s8  }
  0x2b   : > { %p742_p13 = scmp.lt.s32.totalorder %s538_s15, 5  ;;  %p743_p0 = scmp.ge.s32.totalorder %s538_s15, 1 }
  0x2d   : > { %p155_p2 = pnand %p743_p0, %p742_p13 }
  0x2e   : > { %s667_s29 = sand.u32 (!%p155_p2), 1, %s530_s13  }
  0x2f   : > { %158 = sbr.rel (%p155_p2) target bundleno = 259 (0x103), region = 32  ;;  %s384_s30 = sshll.u32 (!%p155_p2), %s667_s29, 1 }
  0x30   : > { %s161_s5 = scalar_lea.sflag (!%p155_p2), [#allocation3], %s667_s29  ;;  %s164_s7 = scalar_lea.vmem (!%p155_p2), [#allocation2], %s384_s30 }
  0x36   : > { %517 = dma.done.wait (%p606_p6), %s161_s5, 32  }
  0x37   : > { %519 = vsyncadd (%p606_p6), %s161_s5, 4294967264  ;;  %v192_v0 = vlaneseq  ;;  %v187_v4 = vld [vmem:[%s164_s7] sm:$0x3]  ;;  %vm202_vm0 = vcmask 1040384   ;;  %v541_v24 = vmov 1966171168  }
  0x38   : > { %v189_v7 = vmul.f32 %v187_v4, %v187_v4  ;;  %v252_v25 = vunpack.c.l.s4 %v541_v24  ;;  %v231_v26 = vld [vmem:[%s733_s1] sm:$0x3]  ;;  %s392_s9 = sshll.u32 %s584_s16, 5  ;;  %s186_s10 = scalar_lea.vmem [#allocation5], %s384_s30 }
  0x39   : > { %v193_v1 = vshrl.u32 %v192_v0, 7  ;;  %v232_v41 = vld [vmem:[%s734_s2] sm:$0x3]  ;;  %s307_s11 = sshll.u32 %s186_s10, 4  ;;  %vm289_vm1 = vcmp.lt.s32.totalorder %v192_v0, 256  ;;  %s689_s20 = scalar_lea.hbm %s735_s3, %s392_s9  ;;  %s691_s11 = int_to_ptr.vmem [resolvable:$true] %s307_s11 }
  0x3a   : > { %v253_v29 = vunpack.c.0.s8 %v252_v25  ;;  %s293_s22 = scalar_lea.sflag [#allocation4], %s667_s29  ;;  %s472_s16 = scalar_lea.vmem %s691_s11, 32 }
  0x3b   : > { %v194_v2 = vsub.s32 0, %v193_v1  ;;  %v198_v3 = vsub.s32 1, %v193_v1  ;;  %p473_p6 = scmp.ne.s32.totalorder %s691_s11, %s472_s16  ;;  %p744_p10 = scmp.ne.s32.totalorder %s739_s24, 0 }
  0x3c   : > { %v256_v31 = vsub.s32 %v253_v29, %v193_v1  ;;  %s542_s26 = smov [#allocation5]  }
  0x3d   : > { %v195_v5 = vrot.slane %v187_v4, %v194_v2  ;;  %v199_v6 = vrot.slane %v187_v4, %v198_v3  ;;  %v213_v11 = vrot.slane %v189_v7, %v194_v2  ;;  %v217_v12 = vrot.slane %v189_v7, %v198_v3  ;;  %p474_p11 = pnand %p473_p6, %p744_p10  ;;  %s476_s27 = sshll.u32 %s542_s26, 4  ;;  %s477_s27 = int_to_ptr.vmem [resolvable:$false] %s476_s27 }
  0x3e   : > { %v237_v27 = vrot.slane %v231_v26, %v194_v2  ;;  %v241_v28 = vrot.slane %v231_v26, %v198_v3  ;;  %s478_s28 = scalar_lea.vmem %s477_s27, 64  ;;  %p479_p4 = scmp.lt.s32.totalorder %s691_s11, %s477_s27 }
  0x3f   : > { %v203_v8 = vsel %vm202_vm0, %v195_v5, 0.0  ;;  %v204_v9 = vsel %vm202_vm0, %v199_v6, 0.0  ;;  %v220_v13 = vsel %vm202_vm0, %v213_v11, 0.0  ;;  %v221_v14 = vsel %vm202_vm0, %v217_v12, 0.0  ;;  %p475_p12 = pneg %p474_p11  ;;  %p480_p9 = scmp.lt.s32.totalorder %s478_s28, %s472_s16 }
  0x40   : > { %v205_v10 = vadd.f32 %v204_v9, %v203_v8  ;;  %v222_v15 = vadd.f32 %v221_v14, %v220_v13 }
  0x41   : > { %p481_p1 = por %p480_p9, %p479_p4 }
  0x42   : > { %206 = vadd.xlane.f32.xlu0 %v205_v10 }
  0x43   : > { %p482_p3 = pnand %p481_p1, %p475_p12 }
  0x46   : > { %223 = vadd.xlane.f32.xlu0 %v222_v15 }
  0xcf   : > { %v207_v16 = vpop.xlane.xlu0 %206 }
  0xd0   : > { %v208_v17 = vmul.f32 0.00390625, %v207_v16 }
  0xd2   : > { %v226_v19 = vmul.f32 %v208_v17, %v208_v17 }
  0xd3   : > { %v224_v18 = vpop.xlane.xlu0 %223 }
  0xd4   : > { %v225_v20 = vmul.f32 0.00390625, %v224_v18 }
  0xd6   : > { %v227_v21 = vsub.f32 %v225_v20, %v226_v19 }
  0xd8   : > { %v228_v22 = vmax.f32 %v227_v21, 0.0 }
  0xda   : > { %v229_v23 = vadd.f32 1e-08, %v228_v22 }
  0xdc   : > { %440 = vrsqrt.f32 %v229_v23 }
  0xe6   : > { %v441_v30 = vpop.eup %440 }
  0xe7   : > { %v244_v32 = vmul.f32 %v441_v30, %v237_v27  ;;  %v245_v33 = vmul.f32 %v441_v30, %v241_v28 }
  0xe9   : > { %v246_v34 = vmul.f32 %v244_v32, %v208_v17  ;;  %v247_v35 = vmul.f32 %v245_v33, %v208_v17  ;;  %v269_v36 = vcombine.low %v244_v32, %v245_v33 }
  0xeb   : > { %v250_v37 = vcombine.low %v246_v34, %v247_v35  ;;  %v276_v38 = vrot.slane %v269_v36, %v256_v31 }
  0xed   : > { %v257_v39 = vrot.slane %v250_v37, %v256_v31  ;;  %v283_v40 = vrot.slane %v276_v38, %v256_v31 }
  0xef   : > { %v264_v42 = vrot.slane %v257_v39, %v256_v31  ;;  %v285_v44 = vmul.f32 %v283_v40, %v187_v4 }
  0xf1   : > { %v266_v43 = vsub.f32 %v232_v41, %v264_v42 }
  0xf3   : > { %v286_v45 = vadd.f32 %v285_v44, %v266_v43 }
  0xf5   : > { %291 = vst.msk [vmem:[%s186_s10] sm:$0x3] %vm289_vm1, %v286_v45 }
  0xf6   : > { %485 = shalt.err (!%p482_p3)
}
  0xf7   : > { %s486_s29 = scalar_lea.hbm %s689_s20, 32  ;;  %s490_s7 = scalar_lea.hbm %s735_s3, 128 }
  0xf8   : > { %p487_p5 = scmp.ne.s32.totalorder %s689_s20, %s486_s29  ;;  %p491_p13 = scmp.lt.u32.totalorder %s689_s20, %s735_s3 }
  0xf9   : > { %p492_p0 = scmp.lt.u32.totalorder %s490_s7, %s486_s29  ;;  %p494_p6 = scmp.lt.u32.totalorder %s486_s29, %s689_s20 }
  0xfa   : > { %p488_p7 = pnand %p487_p5, %p744_p10 }
  0xfb   : > { %p493_p2 = por %p492_p0, %p491_p13 }
  0xfc   : > { %p489_p8 = pneg %p488_p7 }
  0xfd   : > { %p495_p11 = por %p494_p6, %p493_p2 }
  0xff   : > { %p496_p12 = pnand %p495_p11, %p489_p8 }
 0x101   : > { %499 = shalt.err (!%p496_p12)
}
 0x102   : > { %395 = dma.vmem_to_hbm [thread:$0]  (%p744_p10), %s691_s11, 32, %s689_s20, %s293_s22  }
 0x103 PF: > { %p406_p4 = scmp.ge.s32.totalorder %s538_s15, 2  ;;  %s319_s6 = sand.u32 1, %s526_s12  }
 0x104   : > { %p745_p9 = scmp.ne.s32.totalorder %s740_s25, 0  ;;  %s320_s8 = scalar_lea.sflag [#allocation4], %s319_s6 }
 0x106   : > { %p402_p1 = pnand %p406_p4, %p745_p9 }
 0x108   : > { %521 = dma.done.wait (!%p402_p1), %s320_s8, 32  }
 0x109   : > { %523 = vsyncadd (!%p402_p1), %s320_s8, 4294967264  ;;  %p16_p3 = scmp.ge.s32.totalorder %s588_s18, 6   ;;  %s746_s12 = smov %s530_s13 }
 0x10a   : > { %s747_s13 = smov %s534_s14  ;;  %s748_s14 = smov %s600_s21 }
 0x10b   : > { %s749_s15 = smov %s588_s18  ;;  %18 = sbr.rel (!%p16_p3) target bundleno = 5 (0x5), region = 77 }
 0x112   :  { %325 = vsyncpa [#allocation3], 1 }
 0x113   :  { %327 = vsyncpa [#allocation3 + $0x1], 1 }
 0x114   :  { %328 = vsyncpa [#allocation4], 1 }
 0x115   :  { %330 = vsyncpa [#allocation4 + $0x1], 1 }

</bundles_post_ra>
